<compile_context>
chip_gen: v7x
topology: tpu7x:2x2x1
jax: 0.10.0
libtpu: 0.0.40
codegen_flags: <defaults>
</compile_context>

<pallas_src>
import functools

import jax
import jax.numpy as jnp
from jax import lax
from jax.experimental import pallas as pl
from jax.experimental.pallas import tpu as pltpu


_LANE = 128          # TPU lane width; tile sizes must be multiples of this.
_NEG_INF = -1e30     # mask value for padded key positions


def _round_up(x, m):
    return (x + m - 1) // m * m


# --------------------------------------------------------------------------
# Kernels
# --------------------------------------------------------------------------
def _qkv_proj_kernel(x_ref, w_ref, b_ref, qkv_ref):
    # bf16 x / bf16 fused W on the MXU, f32 accumulation, f32 bias add,
    # bf16 store of the qkv intermediate.  Weights were pre-transposed and
    # Q pre-scaled by 1/sqrt(d_k) on the host, so no in-kernel `.T` / scale.
    acc = jnp.dot(x_ref[...], w_ref[...], preferred_element_type=jnp.float32)
    qkv_ref[...] = (acc + b_ref[...]).astype(qkv_ref.dtype)


def _flash_attn_kernel(q_ref, k_ref, v_ref, o_ref, m_sc, l_sc, acc_sc,
                       *, seq_len, tk, n_kv):
    ki = pl.program_id(1)

    @pl.when(ki == 0)
    def _():
        m_sc[...] = jnp.full_like(m_sc, -jnp.inf)
        l_sc[...] = jnp.zeros_like(l_sc)
        acc_sc[...] = jnp.zeros_like(acc_sc)

    q = q_ref[...]          # (tq, dp) bf16; 1/sqrt(d_k) already folded in
    k = k_ref[...]          # (tk, dp) bf16
    v = v_ref[...]          # (tk, dp) bf16

    # scores = q @ k^T by contracting the last dims directly (no XLU
    # transpose of K); bf16 operands, f32 accumulation.
    s = lax.dot_general(q, k, dimension_numbers=(((1,), (1,)), ((), ())),
                        preferred_element_type=jnp.float32)       # (tq, tk)

    def update(scores):
        # Online (flash) softmax update with f32 accumulators.
        m_prev = m_sc[...]
        m_new = jnp.maximum(m_prev, jnp.max(scores, axis=-1, keepdims=True))
        alpha = jnp.exp(m_prev - m_new)
        p = jnp.exp(scores - m_new)
        l_sc[...] = alpha * l_sc[...] + jnp.sum(p, axis=-1, keepdims=True)
        acc_sc[...] = alpha * acc_sc[...] + jnp.dot(
            p.astype(v.dtype), v, preferred_element_type=jnp.float32)
        m_sc[...] = m_new

    def masked_update():
        key_ids = ki * tk + lax.broadcasted_iota(jnp.int32, s.shape, 1)
        update(jnp.where(key_ids < seq_len, s, _NEG_INF))

    # Only kv tiles with index >= first_padded contain zero-padded key rows
    # (padding is always at the end of the sequence), so interior tiles take
    # an unmasked fast path.  Fully-padded tiles are safe: they always come
    # after a tile with real data, so m stays finite and their p underflows
    # to exactly 0.
    first_padded = seq_len // tk        # static python int
    if first_padded >= n_kv:            # no padded keys at all
        update(s)
    elif first_padded == 0:             # every kv tile may contain padding
        masked_update()
    else:
        @pl.when(ki < first_padded)
        def _():
            update(s)

        @pl.when(ki >= first_padded)
        def _():
            masked_update()

    @pl.when(ki == n_kv - 1)
    def _():
        # Exact normalisation (runs once per output tile -> negligible cost).
        inv_l = 1.0 / l_sc[...]
        o_ref[...] = (acc_sc[...] * inv_l).astype(o_ref.dtype)


# --------------------------------------------------------------------------
# Host-side helpers
# --------------------------------------------------------------------------
def prepare_params(params, d_model, num_heads=1):
    """Trace-time weight prep: transpose to `x @ W` layout, fold 1/sqrt(d_k)
    into Wq/bq, fuse Q/K/V into one (dp, 3*dp) matrix, zero-pad d_model up to
    a lane-dense multiple of 128, and store W in bf16 (bias stays f32)."""
    d_k = d_model // num_heads
    scale = jnp.float32(1.0) / jnp.sqrt(jnp.float32(d_k))
    dp = _round_up(d_model, _LANE)

    w = jnp.zeros((dp, 3 * dp), jnp.float32)
    w = w.at[:d_model, 0:d_model].set(params["query.weight"].T * scale)
    w = w.at[:d_model, dp:dp + d_model].set(params["key.weight"].T)
    w = w.at[:d_model, 2 * dp:2 * dp + d_model].set(params["value.weight"].T)

    b = jnp.zeros((1, 3 * dp), jnp.float32)
    b = b.at[0, 0:d_model].set(params["query.bias"] * scale)
    b = b.at[0, dp:dp + d_model].set(params["key.bias"])
    b = b.at[0, 2 * dp:2 * dp + d_model].set(params["value.bias"])
    return w.astype(jnp.bfloat16), b


def _vmem_limit_bytes(tq, tk, dp, tn_qkv):
    """Explicit VMEM arithmetic (double-buffered tiles + scratch), with
    headroom, capped at 64 MiB so it is valid on v5e/v6e/v7x alike."""
    bf16, f32 = 2, 4
    attn = (2 * tq * dp * bf16          # Q tiles (double buffered)
            + 2 * 2 * tk * dp * bf16    # K and V tiles
            + 2 * tq * dp * f32         # output tile
            + tq * dp * f32             # acc scratch
            + 2 * tq * f32)             # m, l scratch
    qkv = (2 * tq * dp * bf16           # x tile
           + 2 * dp * tn_qkv * bf16     # fused-weight column block
           + 2 * tn_qkv * f32           # bias block
           + 2 * tq * tn_qkv * bf16)    # qkv output block
    need = max(attn, qkv)
    return int(min(64 * 2 ** 20, max(32 * 2 ** 20, 2 * need)))


def ailang_self_attention(x, params, num_heads=1, tq=256, tk=256):
    """x: (seq_len, d_model) float32 -> (seq_len, d_model) float32."""
    seq_len, d_model = x.shape
    assert d_model % num_heads == 0
    # The reference forward() is single-head (no head split/reshape); refuse
    # to silently compute the wrong thing for num_heads > 1.
    assert num_heads == 1, "AilangSelfAttention.forward is single-head"

    # Clamp tiles for short sequences; keep everything (8,128)-aligned.
    tq = max(_LANE, min(tq, _round_up(seq_len, _LANE)))
    tk = max(_LANE, min(tk, _round_up(seq_len, _LANE)))
    assert tq % _LANE == 0 and tk % _LANE == 0
    assert max(tq, tk) % min(tq, tk) == 0

    dp = _round_up(d_model, _LANE)          # lane-dense feature dim
    sp = _round_up(seq_len, max(tq, tk))    # padded sequence length
    n_q, n_kv = sp // tq, sp // tk

    # Tile the 3*dp output-column axis of the QKV matmul when the fused
    # weight would otherwise be large in VMEM (v5e scoped-VMEM safety).
    tn_qkv = 3 * dp if 3 * dp <= 1536 else dp
    n_col = (3 * dp) // tn_qkv

    w_qkv, b_qkv = prepare_params(params, d_model, num_heads)
    x_pad = (jnp.zeros((sp, dp), jnp.bfloat16)
             .at[:seq_len, :d_model].set(x.astype(jnp.bfloat16)))

    vmem_limit = _vmem_limit_bytes(tq, tk, dp, tn_qkv)

    # ---- fused QKV projection (bf16 MXU, f32 accumulation) ----------------
    qkv = pl.pallas_call(
        _qkv_proj_kernel,
        out_shape=jax.ShapeDtypeStruct((sp, 3 * dp), jnp.bfloat16),
        grid_spec=pltpu.PrefetchScalarGridSpec(
            num_scalar_prefetch=0,
            grid=(n_q, n_col),
            in_specs=[
                pl.BlockSpec((tq, dp), lambda i, j: (i, 0)),        # x tile
                pl.BlockSpec((dp, tn_qkv), lambda i, j: (0, j)),    # fused W
                pl.BlockSpec((1, tn_qkv), lambda i, j: (0, j)),     # bias
            ],
            out_specs=pl.BlockSpec((tq, tn_qkv), lambda i, j: (i, j)),
        ),
        compiler_params=pltpu.CompilerParams(
            dimension_semantics=("parallel", "parallel"),
            vmem_limit_bytes=vmem_limit),
        cost_estimate=pl.CostEstimate(
            flops=2 * sp * dp * 3 * dp,
            transcendentals=0,
            bytes_accessed=2 * sp * dp + 2 * dp * 3 * dp
                           + 4 * 3 * dp + 2 * sp * 3 * dp),
    )(x_pad, w_qkv, b_qkv)

    # ---- flash-style attention over a (q_tile, kv_tile) grid --------------
    # Q / K / V tiles are read straight out of the fused bf16 qkv buffer via
    # the column block index of each BlockSpec (no host-side slicing copies).
    kernel = functools.partial(_flash_attn_kernel,
                               seq_len=seq_len, tk=tk, n_kv=n_kv)
    out_pad = pl.pallas_call(
        kernel,
        out_shape=jax.ShapeDtypeStruct((sp, dp), jnp.float32),
        grid_spec=pltpu.PrefetchScalarGridSpec(
            num_scalar_prefetch=0,
            grid=(n_q, n_kv),
            in_specs=[
                pl.BlockSpec((tq, dp), lambda qi, ki: (qi, 0)),   # Q tile
                pl.BlockSpec((tk, dp), lambda qi, ki: (ki, 1)),   # K tile
                pl.BlockSpec((tk, dp), lambda qi, ki: (ki, 2)),   # V tile
                # TODO(synk): sweep pipeline_mode=pl.Buffered(3) on K/V if the
                # K/V DMA becomes exposed with larger tiles (mainly v5e).
            ],
            out_specs=pl.BlockSpec((tq, dp), lambda qi, ki: (qi, 0)),
            scratch_shapes=[
                pltpu.VMEM((tq, 1), jnp.float32),    # running max m
                pltpu.VMEM((tq, 1), jnp.float32),    # running sum l
                pltpu.VMEM((tq, dp), jnp.float32),   # output accumulator
            ],
        ),
        compiler_params=pltpu.CompilerParams(
            dimension_semantics=("parallel", "arbitrary"),
            vmem_limit_bytes=vmem_limit),
        cost_estimate=pl.CostEstimate(
            flops=4 * sp * sp * dp,
            transcendentals=sp * sp,
            bytes_accessed=2 * sp * dp * (1 + 2 * n_q) + 4 * sp * dp),
    )(qkv, qkv, qkv)

    return out_pad[:seq_len, :d_model]


# --------------------------------------------------------------------------
# Pure-JAX reference (mirrors the PyTorch forward(), full f32 precision)
# --------------------------------------------------------------------------
def _reference(x, params, num_heads=1):
    d_model = x.shape[-1]
    d_k = d_model // num_heads
    hi = jax.lax.Precision.HIGHEST
    q = jnp.dot(x, params["query.weight"].T, precision=hi) + params["query.bias"]
    k = jnp.dot(x, params["key.weight"].T, precision=hi) + params["key.bias"]
    v = jnp.dot(x, params["value.weight"].T, precision=hi) + params["value.bias"]
    scores = jnp.dot(q, k.T, precision=hi) / jnp.sqrt(jnp.float32(d_k))
    attn = jax.nn.softmax(scores, axis=-1)
    return jnp.dot(attn, v, precision=hi)


if __name__ == "__main__":
    seq_len, d_model = 8, 32

    key = jax.random.PRNGKey(0)
    keys = jax.random.split(key, 10)

    # Deterministic synthetic parameters (PyTorch Linear shapes: (out, in), (out,)).
    # fc_out params are initialized for shape fidelity but unused by forward().
    params = {
        "query.weight": jax.random.normal(keys[0], (d_model, d_model), jnp.float32) * 0.1,
        "query.bias":   jax.random.normal(keys[1], (d_model,), jnp.float32) * 0.1,
        "key.weight":   jax.random.normal(keys[2], (d_model, d_model), jnp.float32) * 0.1,
        "key.bias":     jax.random.normal(keys[3], (d_model,), jnp.float32) * 0.1,
        "value.weight": jax.random.normal(keys[4], (d_model, d_model), jnp.float32) * 0.1,
        "value.bias":   jax.random.normal(keys[5], (d_model,), jnp.float32) * 0.1,
        "fc_out.weight": jax.random.normal(keys[6], (d_model, d_model), jnp.float32) * 0.1,
        "fc_out.bias":   jax.random.normal(keys[7], (d_model,), jnp.float32) * 0.1,
    }

    x = jax.random.normal(keys[8], (seq_len, d_model), jnp.float32)

    out = jax.block_until_ready(ailang_self_attention(x, params))
    ref = _reference(x, params)

    assert out.shape == (seq_len, d_model)
    # Tolerance sized for bf16 MXU operands (f32 accumulation) vs the full
    # f32 reference; typical max abs error is a few 1e-3 at these shapes.
    err = float(jnp.max(jnp.abs(out - ref)))
    assert jnp.allclose(out, ref, atol=3e-2, rtol=3e-2), err

    print("KERNEL_OK")
</pallas_src>

<mosaic_0001>
module attributes {stable_mosaic.version = 11 : i64} {
  func.func @_qkv_proj_kernel(%arg0: i32, %arg1: i32, %arg2: memref<128x128xbf16, #tpu.memory_space<vmem>>, %arg3: memref<128x384xbf16, #tpu.memory_space<vmem>>, %arg4: memref<1x384xf32, #tpu.memory_space<vmem>>, %arg5: memref<128x384xbf16, #tpu.memory_space<vmem>>) attributes {dimension_semantics = [#tpu.dimension_semantics<parallel>, #tpu.dimension_semantics<parallel>], iteration_bounds = array<i64: 1, 1>, scalar_prefetch = 0 : i64, scratch_operands = 0 : i64, tpu.core_type = #tpu.core_type<tc>, window_params = [{transform_indices = @transform_0, window_bounds = array<i64: 128, 128>}, {transform_indices = @transform_1, window_bounds = array<i64: 128, 384>}, {transform_indices = @transform_2, window_bounds = array<i64: 1, 384>}, {transform_indices = @transform_3, window_bounds = array<i64: 128, 384>}]} {
    %c0 = arith.constant 0 : index
    %c0_0 = arith.constant 0 : index
    %0 = vector.load %arg2[%c0, %c0_0] : memref<128x128xbf16, #tpu.memory_space<vmem>>, vector<128x128xbf16>
    %c0_1 = arith.constant 0 : index
    %c0_2 = arith.constant 0 : index
    %1 = vector.load %arg3[%c0_1, %c0_2] : memref<128x384xbf16, #tpu.memory_space<vmem>>, vector<128x384xbf16>
    %cst = arith.constant dense<0.000000e+00> : vector<128x384xf32>
    %2 = tpu.matmul %0, %1, %cst {dimension_numbers = #tpu.dot_dimension_numbers<[1], [0], [0], [1], [0, 0, 1, 1], [], []>} : vector<128x128xbf16>, vector<128x384xbf16>, vector<128x384xf32> -> vector<128x384xf32>
    %c0_3 = arith.constant 0 : index
    %c0_4 = arith.constant 0 : index
    %3 = vector.load %arg4[%c0_3, %c0_4] : memref<1x384xf32, #tpu.memory_space<vmem>>, vector<1x384xf32>
    %4 = vector.broadcast %3 : vector<1x384xf32> to vector<128x384xf32>
    %5 = arith.addf %2, %4 : vector<128x384xf32>
    %6 = arith.truncf %5 : vector<128x384xf32> to vector<128x384xbf16>
    %c0_5 = arith.constant 0 : index
    %c0_6 = arith.constant 0 : index
    %7 = vector.load %arg5[%c0_5, %c0_6] : memref<128x384xbf16, #tpu.memory_space<vmem>>, vector<128x384xbf16>
    tpu.vector_store %arg5[%c0_5, %c0_6], %6 {strides = array<i32>} : memref<128x384xbf16, #tpu.memory_space<vmem>>, vector<128x384xbf16>,
    return
  }
  func.func @transform_0(%arg0: i32, %arg1: i32) -> (i32, i32) {
    %c0_i32 = arith.constant 0 : i32
    %c0_i32_0 = arith.constant 0 : i32
    return %arg0, %c0_i32 : i32, i32
  }
  func.func @transform_1(%arg0: i32, %arg1: i32) -> (i32, i32) {
    %c0_i32 = arith.constant 0 : i32
    %c0_i32_0 = arith.constant 0 : i32
    return %c0_i32, %arg1 : i32, i32
  }
  func.func @transform_2(%arg0: i32, %arg1: i32) -> (i32, i32) {
    %c0_i32 = arith.constant 0 : i32
    %c0_i32_0 = arith.constant 0 : i32
    return %c0_i32, %arg1 : i32, i32
  }
  func.func @transform_3(%arg0: i32, %arg1: i32) -> (i32, i32) {
    %c0_i32 = arith.constant 0 : i32
    return %arg0, %arg1 : i32, i32
  }
}

</mosaic_0001>

<bundles_post_ra>
// kernel: tpu_custom_call.1
= control target key start
LH: loop header
LB: loop body
LE: loop exit
PB: predicated region body
PF: predicated region fallthrough
CT: control target
= control target key end

     0   :  { %8 = vsyncpa [#allocation3], 0  ;;  %s1104_s0 = inlined_call_operand.hbm [shape: bf16[128,128], index: 0, kind: input, shape index: {}]   ;;  %s1105_s1 = inlined_call_operand.hbm [shape: bf16[128,384], index: 1, kind: input, shape index: {}]   ;;  %s1106_s2 = inlined_call_operand.vmem [shape: f32[1,384], index: 2, kind: input, shape index: {}]   ;;  %s1107_s3 = inlined_call_operand.hbm [shape: bf16[128,384], index: 3, kind: output, shape index: {}]  }
   0x1   :  { %9 = vsyncpa [#allocation6], 0 }
   0x2   :  { %10 = vsyncpa [#allocation4], 0  ;;  %s969_s12 = smov [#allocation2]   ;;  %s897_s16 = scalar_lea.hbm %s1104_s0, 1024 }
   0x3   :  { %s16_s13 = sshll.u32 %s969_s12, 4  ;;  %p898_p0 = scmp.ne.s32.totalorder %s1104_s0, %s897_s16  ;;  %s17_s13 = int_to_ptr.vmem [resolvable:$true] %s16_s13 }
   0x4   :  { %p901_p1 = scmp.lt.u32.totalorder %s897_s16, %s1104_s0 }
   0x6   :  { %p903_p2 = pnand %p901_p1, %p898_p0 }
   0x8   :  { %906 = shalt.err (!%p903_p2)
}
   0x9   :  { %s907_s21 = scalar_lea.vmem %s17_s13, 1024  ;;  %p912_p4 = scmp.lt.s32.totalorder %s17_s13, %s17_s13 }
   0xa   :  { %p908_p3 = scmp.ne.s32.totalorder %s17_s13, %s907_s21  ;;  %p913_p5 = scmp.lt.s32.totalorder %s907_s21, %s907_s21 }
   0xc   :  { %p914_p6 = por %p913_p5, %p912_p4 }
   0xe   :  { %p915_p7 = pnand %p914_p6, %p908_p3 }
  0x10   :  { %918 = shalt.err (!%p915_p7)
}
  0x11   :  { %s970_s22 = smov 64   ;;  %s971_s23 = smov 4  }
  0x12   :  { %22 = dma.hbm_to_vmem [thread:$0]  %s1104_s0, 1024, %s17_s13, [#allocation3], %s970_s22, %s970_s22, %s971_s23  }
  0x13   :  { %s972_s26 = smov [#allocation5]   ;;  %s919_s30 = scalar_lea.hbm %s1105_s1, 3072 }
  0x14   :  { %s28_s27 = sshll.u32 %s972_s26, 4  ;;  %p920_p8 = scmp.ne.s32.totalorder %s1105_s1, %s919_s30  ;;  %s29_s27 = int_to_ptr.vmem [resolvable:$true] %s28_s27 }
  0x15   :  { %p923_p9 = scmp.lt.u32.totalorder %s919_s30, %s1105_s1 }
  0x17   :  { %p925_p10 = pnand %p923_p9, %p920_p8 }
  0x19   :  { %928 = shalt.err (!%p925_p10)
}
  0x1a   :  { %s929_s8 = scalar_lea.vmem %s29_s27, 3072  ;;  %p934_p12 = scmp.lt.s32.totalorder %s29_s27, %s29_s27 }
  0x1b   :  { %p930_p11 = scmp.ne.s32.totalorder %s29_s27, %s929_s8  ;;  %p935_p13 = scmp.lt.s32.totalorder %s929_s8, %s929_s8 }
  0x1d   :  { %p936_p0 = por %p935_p13, %p934_p12 }
  0x1f   :  { %p937_p1 = pnand %p936_p0, %p930_p11 }
  0x21   :  { %940 = shalt.err (!%p937_p1)
}
  0x22   :  { %s973_s0 = smov 192   ;;  %s974_s9 = smov 12  }
  0x23   :  { %34 = dma.hbm_to_vmem [thread:$0]  %s1105_s1, 3072, %s29_s27, [#allocation6], %s973_s0, %s973_s0, %s974_s9  }
  0x24   :  { %963 = dma.done.wait [#allocation3], 1024  }
  0x25   :  { %964 = vsyncadd [#allocation3], 4294966272 }
  0x26   :  { %965 = dma.done.wait [#allocation6], 3072  }
  0x27   :  { %966 = vsyncadd [#allocation6], 4294964224  ;;  %v975_v0 = vmov 0   ;;  %v857_v1 = vld [vmem:[#allocation5 + $0x4] ss:$12 sps:$4 sm:$0xff]   ;;  %v885_v26 = vld [vmem:[#allocation2 + $0x8] sm:$0xff]   ;;  %v94_v33 = vlaneseq }
  0x28   :  { %317 = vmatprep.mubr.bf16.mxu0 %v975_v0  ;;  %v859_v2 = vld [vmem:[#allocation5] ss:$12 sps:$4 sm:$0xff]   ;;  %285 = vmatprep.subr.bf16.mxu0 %v857_v1  ;;  %v860_v3 = vld [vmem:[#allocation5 + $0x1c] ss:$12 sps:$4 sm:$0xff]   ;;  %v862_v4 = vld [vmem:[#allocation5 + $0x18] ss:$12 sps:$4 sm:$0xff]  }
  0x29   :  { %286 = vmatpush1.bf16.msra.mxu0 %v859_v2  ;;  %v863_v5 = vld [vmem:[#allocation5 + $0x34] ss:$12 sps:$4 sm:$0xff]   ;;  %v865_v6 = vld [vmem:[#allocation5 + $0x30] ss:$12 sps:$4 sm:$0xff]   ;;  %v866_v7 = vld [vmem:[#allocation5 + $0x4c] ss:$12 sps:$4 sm:$0xff]  }
  0x2a   :  { %287 = vmatprep.subr.bf16.mxu0 %v860_v3  ;;  %v868_v8 = vld [vmem:[#allocation5 + $0x48] ss:$12 sps:$4 sm:$0xff]   ;;  %v869_v9 = vld [vmem:[#allocation5 + $0x64] ss:$12 sps:$4 sm:$0xff]   ;;  %v883_v12 = vld [vmem:[#allocation5 + $0x20] ss:$12 sps:$4 sm:$0xff]  }
  0x2b   :  { %v881_v10 = vld [vmem:[#allocation5 + $0x8] ss:$12 sps:$4 sm:$0xff]   ;;  %v882_v11 = vld [vmem:[#allocation2] sm:$0xff]   ;;  %v886_v17 = vld [vmem:[#allocation5 + $0x50] ss:$12 sps:$4 sm:$0xff]   ;;  %v95_v34 = vshrl.u32 %v94_v33, 7 }
  0x2c   :  { %817 = vmatprep.subr.bf16.mxu1 %v881_v10  ;;  %v871_v13 = vld [vmem:[#allocation5 + $0x60] ss:$12 sps:$4 sm:$0xff]   ;;  %833 = vmatprep.mubr.bf16.mxu1 %v882_v11  ;;  %v884_v14 = vld [vmem:[#allocation5 + $0x38] ss:$12 sps:$4 sm:$0xff]   ;;  %v872_v15 = vld [vmem:[#allocation5 + $0x7c] ss:$12 sps:$4 sm:$0xff]  }
  0x2d   :  { %288 = vmatpush1.bf16.msra.mxu0 %v862_v4  ;;  %818 = vmatpush3.bf16.msra.mxu1 %v881_v10  ;;  %v874_v16 = vld [vmem:[#allocation5 + $0x78] ss:$12 sps:$4 sm:$0xff]   ;;  %v875_v18 = vld [vmem:[#allocation5 + $0x94] ss:$12 sps:$4 sm:$0xff]   ;;  %v877_v19 = vld [vmem:[#allocation5 + $0x90] ss:$12 sps:$4 sm:$0xff]  }
  0x2e   :  { %289 = vmatprep.subr.bf16.mxu0 %v863_v5  ;;  %819 = vmatprep.subr.bf16.mxu1 %v883_v12  ;;  %v887_v20 = vld [vmem:[#allocation5 + $0x68] ss:$12 sps:$4 sm:$0xff]   ;;  %v878_v21 = vld [vmem:[#allocation5 + $0xac] ss:$12 sps:$4 sm:$0xff]   ;;  %v892_v25 = vld [vmem:[#allocation5 + $0xb0] ss:$12 sps:$4 sm:$0xff]  }
  0x2f   :  { %v880_v22 = vld [vmem:[#allocation5 + $0xa8] ss:$12 sps:$4 sm:$0xff]   ;;  %v889_v23 = vld [vmem:[#allocation5 + $0x80] ss:$12 sps:$4 sm:$0xff]   ;;  %v890_v24 = vld [vmem:[#allocation5 + $0x98] ss:$12 sps:$4 sm:$0xff]  }
  0x30   :  { %v888_v27 = vld [vmem:[#allocation2 + $0x10] sm:$0xff]   ;;  %v891_v28 = vld [vmem:[#allocation2 + $0x18] sm:$0xff]   ;;  %v893_v29 = vld [vmem:[#allocation2 + $0x20] sm:$0xff]   ;;  %v96_v35 = vsub.s32 0, %v95_v34  ;;  %v100_v37 = vsub.s32 1, %v95_v34  ;;  %v104_v49 = vsub.s32 2, %v95_v34 }
  0x31   :  { %290 = vmatpush1.bf16.msra.mxu0 %v865_v6  ;;  %820 = vmatpush3.bf16.msra.mxu1 %v883_v12  ;;  %v894_v30 = vld [vmem:[#allocation2 + $0x28] sm:$0xff]   ;;  %v895_v31 = vld [vmem:[#allocation2 + $0x30] sm:$0xff]   ;;  %v896_v32 = vld [vmem:[#allocation2 + $0x38] sm:$0xff]  }
  0x32   :  { %291 = vmatprep.subr.bf16.mxu0 %v866_v7  ;;  %821 = vmatprep.subr.bf16.mxu1 %v884_v14  ;;  %v92_v36 = vld [vmem:[%s1106_s2] sm:$0x7]  ;;  %s976_s2 = smov [#allocation7]  }
  0x33   :  { %v1035_v38 = vrot.slane %v92_v36, %v96_v35  ;;  %v1037_v39 = vrot.slane %v92_v36, %v100_v37  ;;  %v1043_v52 = vrot.slane %v92_v36, %v104_v49  ;;  %s692_s13 = sshll.u32 %s976_s2, 4  ;;  %s693_s13 = int_to_ptr.vmem [resolvable:$true] %s692_s13 }
  0x34   :  { %s941_s14 = scalar_lea.vmem %s693_s13, 3072  ;;  %p946_p3 = scmp.lt.s32.totalorder %s693_s13, %s693_s13 }
  0x35   :  { %292 = vmatpush1.bf16.msra.mxu0 %v868_v8  ;;  %822 = vmatpush3.bf16.msra.mxu1 %v884_v14  ;;  %p942_p2 = scmp.ne.s32.totalorder %s693_s13, %s941_s14  ;;  %p947_p4 = scmp.lt.s32.totalorder %s941_s14, %s941_s14 }
  0x36   :  { %293 = vmatprep.subr.bf16.mxu0 %v869_v9  ;;  %823 = vmatprep.subr.bf16.mxu1 %v886_v17 }
  0x37   :  { %p948_p5 = por %p947_p4, %p946_p3 }
  0x39   :  { %294 = vmatpush1.bf16.msra.mxu0 %v871_v13  ;;  %824 = vmatpush3.bf16.msra.mxu1 %v886_v17  ;;  %p949_p6 = pnand %p948_p5, %p942_p2 }
  0x3a   :  { %295 = vmatprep.subr.bf16.mxu0 %v872_v15  ;;  %825 = vmatprep.subr.bf16.mxu1 %v887_v20 }
  0x3d   :  { %296 = vmatpush1.bf16.msra.mxu0 %v874_v16  ;;  %826 = vmatpush3.bf16.msra.mxu1 %v887_v20 }
  0x3e   :  { %297 = vmatprep.subr.bf16.mxu0 %v875_v18  ;;  %827 = vmatprep.subr.bf16.mxu1 %v889_v23 }
  0x41   :  { %298 = vmatpush1.bf16.msra.mxu0 %v877_v19  ;;  %828 = vmatpush3.bf16.msra.mxu1 %v889_v23 }
  0x42   :  { %299 = vmatprep.subr.bf16.mxu0 %v878_v21  ;;  %829 = vmatprep.subr.bf16.mxu1 %v890_v24 }
  0x45   :  { %300 = vmatpush1.bf16.msra.mxu0 %v880_v22  ;;  %830 = vmatpush3.bf16.msra.mxu1 %v890_v24 }
  0x46   :  { %831 = vmatprep.subr.bf16.mxu1 %v892_v25 }
  0x48   :  { %318 = vmatmul.mubr.bf16.vlgmr.msra.gmra.mrb[0].mxu0 %v882_v11 }
  0x49   :  { %327 = vmatprep.mubr.bf16.mxu0 %v975_v0  ;;  %832 = vmatpush3.bf16.msra.mxu1 %v892_v25 }
  0x4c   :  { %834 = vmatmul.mubr.bf16.vlgmr.msra.gmra.mrb[0].mxu1 %v885_v26 }
  0x4d   :  { %837 = vmatprep.mubr.bf16.mxu1 %v888_v27 }
  0x50   :  { %328 = vmatmul.mubr.bf16.gmra.mrb[4].mxu0 %v885_v26 }
  0x51   :  { %337 = vmatprep.mubr.bf16.mxu0 %v975_v0 }
  0x54   :  { %838 = vmatmul.mubr.bf16.gmra.mrb[4].mxu1 %v891_v28 }
  0x55   :  { %841 = vmatprep.mubr.bf16.mxu1 %v893_v29 }
  0x58   :  { %338 = vmatmul.mubr.bf16.gmra.mrb[8].mxu0 %v888_v27 }
  0x59   :  { %347 = vmatprep.mubr.bf16.mxu0 %v975_v0 }
  0x5c   :  { %842 = vmatmul.mubr.bf16.gmra.mrb[8].mxu1 %v894_v30 }
  0x5d   :  { %845 = vmatprep.mubr.bf16.mxu1 %v895_v31 }
  0x60   :  { %348 = vmatmul.mubr.bf16.gmra.mrb[12].mxu0 %v891_v28 }
  0x61   :  { %357 = vmatprep.mubr.bf16.mxu0 %v975_v0 }
  0x64   :  { %846 = vmatmul.mubr.bf16.gmra.mrb[12].mxu1 %v896_v32 }
  0x68   :  { %358 = vmatmul.mubr.bf16.gmra.mrb[16].mxu0 %v893_v29 }
  0x69   :  { %367 = vmatprep.mubr.bf16.mxu0 %v975_v0 }
  0x70   :  { %368 = vmatmul.mubr.bf16.gmra.mrb[20].mxu0 %v894_v30 }
  0x71   :  { %377 = vmatprep.mubr.bf16.mxu0 %v975_v0 }
  0x78   :  { %378 = vmatmul.mubr.bf16.gmra.mrb[24].mxu0 %v895_v31 }
  0x79   :  { %387 = vmatprep.mubr.bf16.mxu0 %v975_v0 }
  0x80   :  { %388 = vmatmul.mubr.bf16.gmra.mrb[28].mxu0 %v896_v32 }
 0x11b   :  { %v319_v40 = vpop.f32.mrb[0].mxu0 }
 0x11c   :  { %v320_v41 = vadd.f32 %v319_v40, %v1035_v38  ;;  %v321_v42 = vpop.f32.mrb[1].mxu0 }
 0x11d   :  { %v322_v43 = vadd.f32 %v321_v42, %v1037_v39  ;;  %v323_v44 = vpop.f32.mrb[2].mxu0 }
 0x11e   :  { %v324_v45 = vadd.f32 %v323_v44, %v1035_v38  ;;  %v325_v46 = vpop.f32.mrb[3].mxu0 }
 0x11f   :  { %v769_v47 = vpack.c.bf16 %v322_v43, %v320_v41  ;;  %v326_v48 = vadd.f32 %v325_v46, %v1037_v39  ;;  %v835_v59 = vpop.f32.mrb[0].mxu1 }
 0x120   :  { %v441_v62 = vadd.f32 %v835_v59, %v1043_v52  ;;  %v432_v63 = vpop.f32.mrb[1].mxu1 }
 0x121   :  { %655 = vst [vmem:[#allocation7] sm:$0xff] %v769_v47  ;;  %v771_v50 = vpack.c.bf16 %v326_v48, %v324_v45  ;;  %v433_v0 = vadd.f32 %v432_v63, %v1043_v52  ;;  %v836_v1 = vpop.f32.mrb[2].mxu1 }
 0x122   :  { %v774_v3 = vpack.c.bf16 %v441_v62, %v441_v62  ;;  %v444_v4 = vadd.f32 %v836_v1, %v1043_v52  ;;  %v435_v5 = vpop.f32.mrb[3].mxu1 }
 0x123   :  { %657 = vst [vmem:[#allocation7 + $0xc] sm:$0xff] %v771_v50  ;;  %v329_v51 = vpop.f32.mrb[4].mxu0  ;;  %v770_v6 = vpack.c.bf16 %v433_v0, %v433_v0  ;;  %v436_v7 = vadd.f32 %v435_v5, %v1043_v52 }
 0x124   :  { %v330_v53 = vadd.f32 %v329_v51, %v1035_v38  ;;  %v331_v54 = vpop.f32.mrb[5].mxu0  ;;  %660 = vst [vmem:[#allocation7 + $0x20] sm:$0xf] %v774_v3  ;;  %v776_v9 = vpack.c.bf16 %v444_v4, %v444_v4 }
 0x125   :  { %v332_v55 = vadd.f32 %v331_v54, %v1037_v39  ;;  %v333_v56 = vpop.f32.mrb[6].mxu0  ;;  %656 = vst [vmem:[#allocation7 + $0x8] sm:$0xf] %v770_v6  ;;  %v772_v12 = vpack.c.bf16 %v436_v7, %v436_v7 }
 0x126   :  { %v334_v57 = vadd.f32 %v333_v56, %v1035_v38  ;;  %v335_v58 = vpop.f32.mrb[7].mxu0  ;;  %662 = vst [vmem:[#allocation7 + $0x2c] sm:$0xf] %v776_v9 }
 0x127   :  { %v773_v60 = vpack.c.bf16 %v332_v55, %v330_v53  ;;  %v336_v61 = vadd.f32 %v335_v58, %v1037_v39  ;;  %658 = vst [vmem:[#allocation7 + $0x14] sm:$0xf] %v772_v12  ;;  %v839_v17 = vpop.f32.mrb[4].mxu1 }
 0x128   :  { %v457_v20 = vadd.f32 %v839_v17, %v1043_v52  ;;  %v448_v21 = vpop.f32.mrb[5].mxu1 }
 0x129   :  { %659 = vst [vmem:[#allocation7 + $0x18] sm:$0xff] %v773_v60  ;;  %v775_v2 = vpack.c.bf16 %v336_v61, %v334_v57  ;;  %v449_v22 = vadd.f32 %v448_v21, %v1043_v52  ;;  %v840_v23 = vpop.f32.mrb[6].mxu1 }
 0x12a   :  { %v782_v25 = vpack.c.bf16 %v457_v20, %v457_v20  ;;  %v460_v26 = vadd.f32 %v840_v23, %v1043_v52  ;;  %v451_v27 = vpop.f32.mrb[7].mxu1 }
 0x12b   :  { %661 = vst [vmem:[#allocation7 + $0x24] sm:$0xff] %v775_v2  ;;  %v339_v8 = vpop.f32.mrb[8].mxu0  ;;  %v778_v28 = vpack.c.bf16 %v449_v22, %v449_v22  ;;  %v452_v29 = vadd.f32 %v451_v27, %v1043_v52 }
 0x12c   :  { %v340_v10 = vadd.f32 %v339_v8, %v1035_v38  ;;  %v341_v11 = vpop.f32.mrb[9].mxu0  ;;  %668 = vst [vmem:[#allocation7 + $0x50] sm:$0xf] %v782_v25  ;;  %v784_v31 = vpack.c.bf16 %v460_v26, %v460_v26 }
 0x12d   :  { %v342_v13 = vadd.f32 %v341_v11, %v1037_v39  ;;  %v343_v14 = vpop.f32.mrb[10].mxu0  ;;  %664 = vst [vmem:[#allocation7 + $0x38] sm:$0xf] %v778_v28  ;;  %v780_v34 = vpack.c.bf16 %v452_v29, %v452_v29 }
 0x12e   :  { %v344_v15 = vadd.f32 %v343_v14, %v1035_v38  ;;  %v345_v16 = vpop.f32.mrb[11].mxu0  ;;  %670 = vst [vmem:[#allocation7 + $0x5c] sm:$0xf] %v784_v31 }
 0x12f   :  { %v777_v18 = vpack.c.bf16 %v342_v13, %v340_v10  ;;  %v346_v19 = vadd.f32 %v345_v16, %v1037_v39  ;;  %666 = vst [vmem:[#allocation7 + $0x44] sm:$0xf] %v780_v34  ;;  %v843_v41 = vpop.f32.mrb[8].mxu1 }
 0x130   :  { %v473_v44 = vadd.f32 %v843_v41, %v1043_v52  ;;  %v464_v45 = vpop.f32.mrb[9].mxu1 }
 0x131   :  { %663 = vst [vmem:[#allocation7 + $0x30] sm:$0xff] %v777_v18  ;;  %v779_v24 = vpack.c.bf16 %v346_v19, %v344_v15  ;;  %v465_v46 = vadd.f32 %v464_v45, %v1043_v52  ;;  %v844_v47 = vpop.f32.mrb[10].mxu1 }
 0x132   :  { %v790_v49 = vpack.c.bf16 %v473_v44, %v473_v44  ;;  %v476_v50 = vadd.f32 %v844_v47, %v1043_v52  ;;  %v467_v51 = vpop.f32.mrb[11].mxu1 }
 0x133   :  { %665 = vst [vmem:[#allocation7 + $0x3c] sm:$0xff] %v779_v24  ;;  %v349_v30 = vpop.f32.mrb[12].mxu0  ;;  %v786_v53 = vpack.c.bf16 %v465_v46, %v465_v46  ;;  %v468_v54 = vadd.f32 %v467_v51, %v1043_v52 }
 0x134   :  { %v350_v32 = vadd.f32 %v349_v30, %v1035_v38  ;;  %v351_v33 = vpop.f32.mrb[13].mxu0  ;;  %676 = vst [vmem:[#allocation7 + $0x80] sm:$0xf] %v790_v49  ;;  %v792_v56 = vpack.c.bf16 %v476_v50, %v476_v50 }
 0x135   :  { %v352_v35 = vadd.f32 %v351_v33, %v1037_v39  ;;  %v353_v36 = vpop.f32.mrb[14].mxu0  ;;  %672 = vst [vmem:[#allocation7 + $0x68] sm:$0xf] %v786_v53  ;;  %v788_v59 = vpack.c.bf16 %v468_v54, %v468_v54 }
 0x136   :  { %v354_v37 = vadd.f32 %v353_v36, %v1035_v38  ;;  %v355_v40 = vpop.f32.mrb[15].mxu0  ;;  %678 = vst [vmem:[#allocation7 + $0x8c] sm:$0xf] %v792_v56 }
 0x137   :  { %v781_v42 = vpack.c.bf16 %v352_v35, %v350_v32  ;;  %v356_v43 = vadd.f32 %v355_v40, %v1037_v39  ;;  %674 = vst [vmem:[#allocation7 + $0x74] sm:$0xf] %v788_v59  ;;  %v847_v0 = vpop.f32.mrb[12].mxu1 }
 0x138   :  { %v489_v3 = vadd.f32 %v847_v0, %v1043_v52  ;;  %v480_v4 = vpop.f32.mrb[13].mxu1 }
 0x139   :  { %667 = vst [vmem:[#allocation7 + $0x48] sm:$0xff] %v781_v42  ;;  %v783_v48 = vpack.c.bf16 %v356_v43, %v354_v37  ;;  %v481_v5 = vadd.f32 %v480_v4, %v1043_v52  ;;  %v848_v6 = vpop.f32.mrb[14].mxu1 }
 0x13a   :  { %v798_v8 = vpack.c.bf16 %v489_v3, %v489_v3  ;;  %v492_v9 = vadd.f32 %v848_v6, %v1043_v52  ;;  %v483_v10 = vpop.f32.mrb[15].mxu1 }
 0x13b   :  { %669 = vst [vmem:[#allocation7 + $0x54] sm:$0xff] %v783_v48  ;;  %v359_v55 = vpop.f32.mrb[16].mxu0  ;;  %v794_v11 = vpack.c.bf16 %v481_v5, %v481_v5  ;;  %v484_v12 = vadd.f32 %v483_v10, %v1043_v52 }
 0x13c   :  { %v360_v57 = vadd.f32 %v359_v55, %v1035_v38  ;;  %v361_v58 = vpop.f32.mrb[17].mxu0  ;;  %684 = vst [vmem:[#allocation7 + $0xb0] sm:$0xf] %v798_v8  ;;  %v800_v14 = vpack.c.bf16 %v492_v9, %v492_v9 }
 0x13d   :  { %v362_v60 = vadd.f32 %v361_v58, %v1037_v39  ;;  %v363_v61 = vpop.f32.mrb[18].mxu0  ;;  %680 = vst [vmem:[#allocation7 + $0x98] sm:$0xf] %v794_v11  ;;  %v796_v17 = vpack.c.bf16 %v484_v12, %v484_v12 }
 0x13e   :  { %v364_v62 = vadd.f32 %v363_v61, %v1035_v38  ;;  %v365_v63 = vpop.f32.mrb[19].mxu0  ;;  %686 = vst [vmem:[#allocation7 + $0xbc] sm:$0xf] %v800_v14 }
 0x13f   :  { %v785_v1 = vpack.c.bf16 %v362_v60, %v360_v57  ;;  %v366_v2 = vadd.f32 %v365_v63, %v1037_v39  ;;  %682 = vst [vmem:[#allocation7 + $0xa4] sm:$0xf] %v796_v17 }
 0x141   :  { %671 = vst [vmem:[#allocation7 + $0x60] sm:$0xff] %v785_v1  ;;  %v787_v7 = vpack.c.bf16 %v366_v2, %v364_v62 }
 0x143   :  { %673 = vst [vmem:[#allocation7 + $0x6c] sm:$0xff] %v787_v7  ;;  %v369_v13 = vpop.f32.mrb[20].mxu0 }
 0x144   :  { %v370_v15 = vadd.f32 %v369_v13, %v1035_v38  ;;  %v371_v16 = vpop.f32.mrb[21].mxu0 }
 0x145   :  { %v372_v18 = vadd.f32 %v371_v16, %v1037_v39  ;;  %v373_v19 = vpop.f32.mrb[22].mxu0 }
 0x146   :  { %v374_v20 = vadd.f32 %v373_v19, %v1035_v38  ;;  %v375_v21 = vpop.f32.mrb[23].mxu0 }
 0x147   :  { %v789_v22 = vpack.c.bf16 %v372_v18, %v370_v15  ;;  %v376_v52 = vadd.f32 %v375_v21, %v1037_v39 }
 0x149   :  { %675 = vst [vmem:[#allocation7 + $0x78] sm:$0xff] %v789_v22  ;;  %v791_v23 = vpack.c.bf16 %v376_v52, %v374_v20 }
 0x14b   :  { %677 = vst [vmem:[#allocation7 + $0x84] sm:$0xff] %v791_v23  ;;  %v379_v24 = vpop.f32.mrb[24].mxu0 }
 0x14c   :  { %v380_v25 = vadd.f32 %v379_v24, %v1035_v38  ;;  %v381_v26 = vpop.f32.mrb[25].mxu0 }
 0x14d   :  { %v382_v27 = vadd.f32 %v381_v26, %v1037_v39  ;;  %v383_v28 = vpop.f32.mrb[26].mxu0 }
 0x14e   :  { %v384_v29 = vadd.f32 %v383_v28, %v1035_v38  ;;  %v385_v30 = vpop.f32.mrb[27].mxu0 }
 0x14f   :  { %v793_v31 = vpack.c.bf16 %v382_v27, %v380_v25  ;;  %v386_v32 = vadd.f32 %v385_v30, %v1037_v39 }
 0x151   :  { %679 = vst [vmem:[#allocation7 + $0x90] sm:$0xff] %v793_v31  ;;  %v795_v33 = vpack.c.bf16 %v386_v32, %v384_v29 }
 0x153   :  { %681 = vst [vmem:[#allocation7 + $0x9c] sm:$0xff] %v795_v33  ;;  %v389_v34 = vpop.f32.mrb[28].mxu0 }
 0x154   :  { %v390_v35 = vadd.f32 %v389_v34, %v1035_v38  ;;  %v391_v36 = vpop.f32.mrb[29].mxu0 }
 0x155   :  { %v392_v37 = vadd.f32 %v391_v36, %v1037_v39  ;;  %v393_v40 = vpop.f32.mrb[30].mxu0 }
 0x156   :  { %v394_v41 = vadd.f32 %v393_v40, %v1035_v38  ;;  %v395_v42 = vpop.f32.mrb[31].mxu0 }
 0x157   :  { %v797_v43 = vpack.c.bf16 %v392_v37, %v390_v35  ;;  %v396_v44 = vadd.f32 %v395_v42, %v1037_v39 }
 0x159   :  { %683 = vst [vmem:[#allocation7 + $0xa8] sm:$0xff] %v797_v43  ;;  %v799_v45 = vpack.c.bf16 %v396_v44, %v394_v41 }
 0x15b   :  { %685 = vst [vmem:[#allocation7 + $0xb4] sm:$0xff] %v799_v45 }
 0x15c   :  { %952 = shalt.err (!%p949_p6)
}
 0x15d   :  { %s953_s17 = scalar_lea.hbm %s1107_s3, 3072 }
 0x15e   :  { %p954_p7 = scmp.ne.s32.totalorder %s1107_s3, %s953_s17  ;;  %p957_p8 = scmp.lt.u32.totalorder %s953_s17, %s1107_s3 }
 0x160   :  { %p959_p9 = pnand %p957_p8, %p954_p7 }
 0x162   :  { %962 = shalt.err (!%p959_p9)
}
 0x163   :  { %698 = dma.vmem_to_hbm [thread:$0]  %s693_s13, 3072, %s1107_s3, [#allocation4], %s973_s0, %s973_s0, %s974_s9  }
 0x164   :  { %967 = dma.done.wait [#allocation4], 3072  }
 0x165   :  { %968 = vsyncadd [#allocation4], 4294964224 }
 0x166   :  { %702 = vsyncpa [#allocation3], 1 }
 0x167   :  { %703 = vsyncpa [#allocation6], 1 }
 0x168   :  { %704 = vsyncpa [#allocation4], 1 }

</bundles_post_ra>
